<compile_context>
chip_gen: v7x
topology: tpu7x:2x2x1
jax: 0.10.0
libtpu: 0.0.40
codegen_flags: <defaults>
</compile_context>

<pallas_src>
import jax
import jax.numpy as jnp
from jax import lax
from jax.experimental import pallas as pl
from jax.experimental.pallas import tpu as pltpu


def _make_kernel(c_m_p, c_n, concat):
    """Build the kernel body (specialized on concat so y is only read if needed)."""

    def kernel(*refs):
        if concat:
            (x_ref, w_ab_ref, w_v_ref, b_a_ref, b_v_ref, y_ref,
             o_ref, m_sc, s_sc, g_sc, gn_sc) = refs
        else:
            (x_ref, w_ab_ref, w_v_ref, b_a_ref, b_v_ref,
             o_ref, m_sc, s_sc, g_sc, gn_sc) = refs
            y_ref = None

        p = pl.program_id(1)          # 0: B stats / G accumulation, 1: Z emission
        t = pl.program_id(2)          # spatial tile
        x_t = x_ref[0]                # (Cin, T) bf16 — spatial on lanes

        @pl.when(jnp.logical_and(p == 0, t == 0))
        def _init():
            m_sc[...] = jnp.full_like(m_sc, -jnp.inf)
            s_sc[...] = jnp.zeros_like(s_sc)
            g_sc[...] = jnp.zeros_like(g_sc)

        @pl.when(p == 0)
        def _pass0():
            # Fused convA|convB with NO bias: bB is a no-op through the spatial
            # softmax and bA is applied once per batch at pass-1 fold time.
            ab = jnp.dot(w_ab_ref[...], x_t,
                         preferred_element_type=jnp.float32)       # (c_m_p+c_n, T)
            a_mat = ab[:c_m_p, :]                                   # (c_m_p, T)
            b_mat = ab[c_m_p:, :]                                   # (c_n, T)

            # Online softmax over the spatial axis, per B channel.  G is stored
            # as (c_n, c_m_p) so `alpha * g` broadcasts over rows directly.
            m_prev = m_sc[...]                                      # (c_n, 1)
            m_new = jnp.maximum(m_prev, jnp.max(b_mat, axis=1, keepdims=True))
            alpha = jnp.exp(m_prev - m_new)                         # (c_n, 1)
            e_b = jnp.exp(b_mat - m_new)                            # (c_n, T)

            s_sc[...] = alpha * s_sc[...] + jnp.sum(e_b, axis=1, keepdims=True)
            g_sc[...] = alpha * g_sc[...] + lax.dot_general(
                e_b.astype(jnp.bfloat16), a_mat.astype(jnp.bfloat16),
                (((1,), (1,)), ((), ())),
                preferred_element_type=jnp.float32)                 # (c_n, c_m_p)
            m_sc[...] = m_new

        @pl.when(p == 1)
        def _pass1():
            @pl.when(t == 0)
            def _fold():
                # Fold B-softmax denominator and convA bias into G once per
                # batch: G[m,n] = g[n,m] / s_B[n] + bA[m].  Store it already
                # transposed to (c_m_p, c_n) in bf16; the tiny once-per-batch
                # transpose uses an identity matmul (MXU-friendly, contraction
                # on dim 1 of both operands).
                g_norm = (g_sc[...] * pl.reciprocal(s_sc[...], approx=True)
                          + b_a_ref[...])                           # (c_n, c_m_p) f32
                rows = lax.broadcasted_iota(jnp.int32, (c_m_p, c_m_p), 0)
                cols = lax.broadcasted_iota(jnp.int32, (c_m_p, c_m_p), 1)
                eye = (rows == cols).astype(jnp.float32)
                gn_sc[...] = lax.dot_general(
                    eye.astype(jnp.bfloat16), g_norm.astype(jnp.bfloat16),
                    (((1,), (1,)), ((), ())),
                    preferred_element_type=jnp.float32).astype(jnp.bfloat16)

            v = jnp.dot(w_v_ref[...], x_t,
                        preferred_element_type=jnp.float32) + b_v_ref[...]
            e_v = jnp.exp(v - jnp.max(v, axis=0, keepdims=True))    # (c_n, T)
            s_pos = jnp.sum(e_v, axis=0, keepdims=True)             # (1, T)

            z = jnp.dot(gn_sc[...], e_v.astype(jnp.bfloat16),
                        preferred_element_type=jnp.float32)         # (c_m_p, T)
            z = z * pl.reciprocal(s_pos, approx=True)               # V-softmax denom
            if concat:
                z = z + y_ref[0]
            o_ref[0] = z.astype(o_ref.dtype)

    return kernel


def _round_up(n, m):
    return ((n + m - 1) // m) * m


def _vmem_budget_bytes():
    """~3/4 of physical VMEM for this generation (128 MiB v5e/v6e, 64 MiB v7x)."""
    phys = 64 * 1024 * 1024            # conservative default (v7x-sized)
    try:
        phys = int(getattr(pltpu.get_tpu_info(), "vmem_capacity_bytes", phys))
    except Exception:
        pass
    return max(32 * 1024 * 1024, (phys * 3) // 4)


def _est_tile_vmem_bytes(t, c_in, c_m_p, c_n, concat):
    """Rough per-tile VMEM footprint used by the spatial-tile auto-picker."""
    b = 2 * t * c_in * 2                        # x block, bf16, double-buffered
    b += 2 * t * c_m_p * 4                      # out block, f32, double-buffered
    if concat:
        b += 2 * t * c_m_p * 4                  # y block, f32, double-buffered
    b += 4 * t * (3 * c_m_p + 6 * c_n)          # in-kernel f32/bf16 intermediates
    b += (c_m_p + 2 * c_n) * c_in * 2 + 4096    # weights + tiny scratch
    return b


def double_attention_bibranch(x, y, params, *, k=1, concat=True,
                              spatial_tile=None, out_dtype=jnp.float32):
    """x: (b1, Cin, H, W), y: (b1, c_m, H, W) float32.  params: wA/bA/wB/bB/wV/bV
    with weights as (Cin, Cout) and biases as (1, Cout)."""
    b1, c_in, h, w = x.shape
    c_m = params["wA"].shape[1]
    c_n = params["wB"].shape[1]
    assert b1 % k == 0, "batch must be divisible by K"
    batch = b1 // k
    hw = h * w
    khw = k * hw

    c_m_p = _round_up(c_m, 8)   # sublane-aligned A|B split + dense output channels

    vmem_budget = _vmem_budget_bytes()
    if spatial_tile is None:
        est = lambda tt: _est_tile_vmem_bytes(tt, c_in, c_m_p, c_n, concat)
        if khw % 128 == 0 and est(khw) <= vmem_budget:
            # Single spatial tile: x is DMA'd once (no re-read across the pass
            # axis) and the online-softmax rescale becomes a single step.
            spatial_tile = khw
        else:
            spatial_tile = 0
            for cand in (32768, 16384, 8192, 4096, 2048, 1024, 512, 256, 128):
                if khw % cand == 0 and est(cand) <= vmem_budget:
                    spatial_tile = cand
                    break
            if spatial_tile == 0:
                # TODO(synk): pad khw to a multiple of 128 (masking pad columns
                # out of the spatial-softmax stats) instead of a full-extent
                # block, which can exceed VMEM on v7x for very large images.
                spatial_tile = khw
    assert khw % spatial_tile == 0
    n_tiles = khw // spatial_tile

    # channels-first, K-major spatial flatten: (batch, C, K*H*W), channel-padded
    def to_cf(a, c, c_pad, dtype):
        a = a.reshape(batch, k, c, hw)
        a = jnp.transpose(a, (0, 2, 1, 3)).reshape(batch, c, khw)
        if c_pad > c:
            a = jnp.pad(a, ((0, 0), (0, c_pad - c), (0, 0)))
        return a.astype(dtype)

    x_cf = to_cf(x, c_in, c_in, jnp.bfloat16)

    # Fused convA|convB weights, channels-first (Cout, Cin); A rows zero-padded
    # so the A|B split lands on an (8,128) boundary.  Biases: bB dropped
    # (spatial-softmax no-op), bA applied in-kernel as a rank-1 correction,
    # bV added before the channel softmax.
    w_a_t = jnp.pad(params["wA"].T, ((0, c_m_p - c_m), (0, 0)))
    w_ab = jnp.concatenate([w_a_t, params["wB"].T], axis=0).astype(jnp.bfloat16)
    w_v = params["wV"].T.astype(jnp.bfloat16)                        # (c_n, Cin)
    b_a = jnp.pad(params["bA"].reshape(1, c_m),
                  ((0, 0), (0, c_m_p - c_m))).astype(jnp.float32)    # (1, c_m_p)
    b_v = params["bV"].reshape(c_n, 1).astype(jnp.float32)           # (c_n, 1)

    full = lambda b, p, t: (0, 0)
    in_specs = [
        pl.BlockSpec((1, c_in, spatial_tile), lambda b, p, t: (b, 0, t)),
        pl.BlockSpec((c_m_p + c_n, c_in), full),
        pl.BlockSpec((c_n, c_in), full),
        pl.BlockSpec((1, c_m_p), full),
        pl.BlockSpec((c_n, 1), full),
    ]
    args = [x_cf, w_ab, w_v, b_a, b_v]
    if concat:
        # Only streamed during pass 1 (t*p pins the block to tile 0 in pass 0).
        in_specs.append(
            pl.BlockSpec((1, c_m_p, spatial_tile), lambda b, p, t: (b, 0, t * p)))
        args.append(to_cf(y, c_m, c_m_p, jnp.float32))

    out = pl.pallas_call(
        _make_kernel(c_m_p, c_n, concat),
        out_shape=jax.ShapeDtypeStruct((batch, c_m_p, khw), out_dtype),
        grid_spec=pltpu.PrefetchScalarGridSpec(
            num_scalar_prefetch=0,
            grid=(batch, 2, n_tiles),
            in_specs=in_specs,
            out_specs=pl.BlockSpec((1, c_m_p, spatial_tile),
                                   lambda b, p, t: (b, 0, t * p)),
            scratch_shapes=[
                pltpu.VMEM((c_n, 1), jnp.float32),        # running max of B
                pltpu.VMEM((c_n, 1), jnp.float32),        # running sum of exp(B)
                pltpu.VMEM((c_n, c_m_p), jnp.float32),    # G accumulator
                pltpu.VMEM((c_m_p, c_n), jnp.bfloat16),   # normalized G (bf16)
            ]),
        # TODO(synk): on v7x (2 TCs/chip) shard the batch axis with CORE_PARALLEL;
        # the pass/tile axes must stay "arbitrary" (per-batch scratch state).
        compiler_params=pltpu.CompilerParams(
            dimension_semantics=("parallel", "arbitrary", "arbitrary"),
            vmem_limit_bytes=int(vmem_budget)),
    )(*args)

    if c_m_p > c_m:
        out = out[:, :c_m, :]
    out = out.reshape(batch, c_m, k, hw)
    out = jnp.transpose(out, (0, 2, 1, 3)).reshape(b1, c_m, h, w)
    return out


def _reference(x, y, params, *, k=1, concat=True):
    """Plain-JAX (f32) mirror of the PyTorch forward, for verification."""
    b1, c_in, h, w = x.shape
    c_m = params["wA"].shape[1]
    c_n = params["wB"].shape[1]
    batch, hw = b1 // k, h * w

    def conv1x1(inp, wgt, bias):
        return jnp.einsum("bchw,cd->bdhw", inp, wgt) + bias.reshape(1, -1, 1, 1)

    A = conv1x1(x, params["wA"], params["bA"])
    B = conv1x1(x, params["wB"], params["bB"])
    V = conv1x1(x, params["wV"], params["bV"])

    tmpA = A.reshape(batch, k, c_m, hw).transpose(0, 2, 1, 3).reshape(batch, c_m, k * hw)
    tmpB = B.reshape(batch, k, c_n, hw).transpose(0, 2, 1, 3).reshape(batch * c_n, k * hw)
    tmpV = V.reshape(batch, k, c_n, hw).transpose(0, 1, 3, 2).reshape(b1 * hw, c_n)
    sB = jax.nn.softmax(tmpB, axis=1).reshape(batch, c_n, k * hw).transpose(0, 2, 1)
    sV = jax.nn.softmax(tmpV, axis=1).reshape(batch, k * hw, c_n).transpose(0, 2, 1)
    G = jnp.matmul(tmpA, sB)
    Z = jnp.matmul(G, sV)
    Z = Z.reshape(batch, c_m, k, hw).transpose(0, 2, 1, 3).reshape(b1, c_m, h, w)
    return Z + y if concat else Z


if __name__ == "__main__":
    def make_case(ks, b1, c_in, h, w, c_m, c_n):
        params = {
            "wA": jax.random.normal(ks[0], (c_in, c_m), jnp.float32) * 0.1,
            "bA": jax.random.normal(ks[1], (1, c_m), jnp.float32) * 0.1,
            "wB": jax.random.normal(ks[2], (c_in, c_n), jnp.float32) * 0.1,
            "bB": jax.random.normal(ks[3], (1, c_n), jnp.float32) * 0.1,
            "wV": jax.random.normal(ks[4], (c_in, c_n), jnp.float32) * 0.1,
            "bV": jax.random.normal(ks[5], (1, c_n), jnp.float32) * 0.1,
        }
        x = jax.random.normal(ks[6], (b1, c_in, h, w), jnp.float32)
        y = jax.random.normal(ks[7], (b1, c_m, h, w), jnp.float32)
        return params, x, y

    # Case 1: B=2, Cin=4, H=W=16, c_m=8, c_n=4, K=1 — default auto tile
    # (single spatial tile fast path: x DMA'd once per batch element).
    ks = jax.random.split(jax.random.PRNGKey(0), 8)
    params, x, y = make_case(ks, 2, 4, 16, 16, 8, 4)
    out = jax.block_until_ready(
        double_attention_bibranch(x, y, params, k=1, concat=True))
    ref = _reference(x, y, params, k=1, concat=True)
    assert out.shape == ref.shape == (2, 8, 16, 16)
    err = float(jnp.max(jnp.abs(out - ref)))
    assert jnp.allclose(out, ref, atol=2e-2, rtol=2e-2), err   # bf16 matmul tolerance

    # Case 2: forced small tile -> exercises the streaming online-softmax path.
    out_t = jax.block_until_ready(
        double_attention_bibranch(x, y, params, k=1, concat=True, spatial_tile=128))
    err_t = float(jnp.max(jnp.abs(out_t - ref)))
    assert jnp.allclose(out_t, ref, atol=2e-2, rtol=2e-2), err_t

    # Case 3: concat=False specialization (y stream never read).
    out_nc = jax.block_until_ready(
        double_attention_bibranch(x, y, params, k=1, concat=False))
    ref_nc = _reference(x, y, params, k=1, concat=False)
    err_nc = float(jnp.max(jnp.abs(out_nc - ref_nc)))
    assert jnp.allclose(out_nc, ref_nc, atol=2e-2, rtol=2e-2), err_nc

    # Case 4: K=2 and c_m not a multiple of 8 -> exercises channel padding.
    ks2 = jax.random.split(jax.random.PRNGKey(1), 8)
    params2, x2, y2 = make_case(ks2, 2, 4, 16, 16, 6, 4)
    out2 = jax.block_until_ready(
        double_attention_bibranch(x2, y2, params2, k=2, concat=True))
    ref2 = _reference(x2, y2, params2, k=2, concat=True)
    err2 = float(jnp.max(jnp.abs(out2 - ref2)))
    assert out2.shape == ref2.shape == (2, 6, 16, 16)
    assert jnp.allclose(out2, ref2, atol=2e-2, rtol=2e-2), err2

    print("KERNEL_OK")
</pallas_src>

<mosaic_0001>
module attributes {stable_mosaic.version = 11 : i64} {
  func.func @kernel(%arg0: i32, %arg1: i32, %arg2: i32, %arg3: memref<1x4x256xbf16, #tpu.memory_space<vmem>>, %arg4: memref<12x4xbf16, #tpu.memory_space<vmem>>, %arg5: memref<4x4xbf16, #tpu.memory_space<vmem>>, %arg6: memref<1x8xf32, #tpu.memory_space<vmem>>, %arg7: memref<4x1xf32, #tpu.memory_space<vmem>>, %arg8: memref<1x8x256xf32, #tpu.memory_space<vmem>>, %arg9: memref<1x8x256xf32, #tpu.memory_space<vmem>>, %arg10: memref<4x1xf32, #tpu.memory_space<vmem>>, %arg11: memref<4x1xf32, #tpu.memory_space<vmem>>, %arg12: memref<4x8xf32, #tpu.memory_space<vmem>>, %arg13: memref<8x4xbf16, #tpu.memory_space<vmem>>) attributes {dimension_semantics = [#tpu.dimension_semantics<parallel>, #tpu.dimension_semantics<arbitrary>, #tpu.dimension_semantics<arbitrary>], iteration_bounds = array<i64: 2, 2, 1>, scalar_prefetch = 0 : i64, scratch_operands = 4 : i64, tpu.core_type = #tpu.core_type<tc>, window_params = [{transform_indices = @transform_0, window_bounds = array<i64: 1, 4, 256>}, {pipeline_mode = #tpu.pipeline_mode<synchronous>, transform_indices = @transform_1, window_bounds = array<i64: 12, 4>}, {pipeline_mode = #tpu.pipeline_mode<synchronous>, transform_indices = @transform_2, window_bounds = array<i64: 4, 4>}, {pipeline_mode = #tpu.pipeline_mode<synchronous>, transform_indices = @transform_3, window_bounds = array<i64: 1, 8>}, {pipeline_mode = #tpu.pipeline_mode<synchronous>, transform_indices = @transform_4, window_bounds = array<i64: 4, 1>}, {transform_indices = @transform_5, window_bounds = array<i64: 1, 8, 256>}, {transform_indices = @transform_6, window_bounds = array<i64: 1, 8, 256>}]} {
    %c0 = arith.constant 0 : index
    %c0_0 = arith.constant 0 : index
    %c0_1 = arith.constant 0 : index
    %0 = vector.load %arg3[%c0, %c0_0, %c0_1] : memref<1x4x256xbf16, #tpu.memory_space<vmem>>, vector<1x4x256xbf16>
    %1 = vector.shape_cast %0 : vector<1x4x256xbf16> to vector<4x256xbf16>
    %c0_i32 = arith.constant 0 : i32
    %2 = arith.cmpi eq, %arg1, %c0_i32 : i32
    %c0_i32_2 = arith.constant 0 : i32
    %3 = arith.cmpi eq, %arg2, %c0_i32_2 : i32
    %4 = arith.andi %2, %3 : i1
    %5 = arith.extui %4 : i1 to i32
    %c0_i32_3 = arith.constant 0 : i32
    %6 = arith.cmpi ne, %5, %c0_i32_3 : i32
    scf.if %6 {
      %cst = arith.constant 0xFF800000 : f32
      %13 = vector.broadcast %cst : f32 to vector<4x1xf32>
      %c0_7 = arith.constant 0 : index
      %c0_8 = arith.constant 0 : index
      %14 = vector.load %arg10[%c0_7, %c0_8] : memref<4x1xf32, #tpu.memory_space<vmem>>, vector<4x1xf32>
      tpu.vector_store %arg10[%c0_7, %c0_8], %13 {strides = array<i32>} : memref<4x1xf32, #tpu.memory_space<vmem>>, vector<4x1xf32>,
      %cst_9 = arith.constant 0.000000e+00 : f32
      %15 = vector.broadcast %cst_9 : f32 to vector<4x1xf32>
      %c0_10 = arith.constant 0 : index
      %c0_11 = arith.constant 0 : index
      %16 = vector.load %arg11[%c0_10, %c0_11] : memref<4x1xf32, #tpu.memory_space<vmem>>, vector<4x1xf32>
      tpu.vector_store %arg11[%c0_10, %c0_11], %15 {strides = array<i32>} : memref<4x1xf32, #tpu.memory_space<vmem>>, vector<4x1xf32>,
      %cst_12 = arith.constant 0.000000e+00 : f32
      %17 = vector.broadcast %cst_12 : f32 to vector<4x8xf32>
      %c0_13 = arith.constant 0 : index
      %c0_14 = arith.constant 0 : index
      %18 = vector.load %arg12[%c0_13, %c0_14] : memref<4x8xf32, #tpu.memory_space<vmem>>, vector<4x8xf32>
      tpu.vector_store %arg12[%c0_13, %c0_14], %17 {strides = array<i32>} : memref<4x8xf32, #tpu.memory_space<vmem>>, vector<4x8xf32>,
    } else {
    }
    %c0_i32_4 = arith.constant 0 : i32
    %7 = arith.cmpi eq, %arg1, %c0_i32_4 : i32
    %8 = arith.extui %7 : i1 to i32
    %c0_i32_5 = arith.constant 0 : i32
    %9 = arith.cmpi ne, %8, %c0_i32_5 : i32
    scf.if %9 {
      %c0_7 = arith.constant 0 : index
      %c0_8 = arith.constant 0 : index
      %13 = vector.load %arg4[%c0_7, %c0_8] : memref<12x4xbf16, #tpu.memory_space<vmem>>, vector<12x4xbf16>
      %cst = arith.constant dense<0.000000e+00> : vector<12x256xf32>
      %14 = tpu.matmul %13, %1, %cst {dimension_numbers = #tpu.dot_dimension_numbers<[1], [0], [0], [1], [0, 0, 1, 1], [], []>} : vector<12x4xbf16>, vector<4x256xbf16>, vector<12x256xf32> -> vector<12x256xf32>
      %15 = vector.extract_strided_slice %14 {offsets = [0, 0], sizes = [8, 256], strides = [1, 1]} : vector<12x256xf32> to vector<8x256xf32>
      %16 = vector.extract_strided_slice %14 {offsets = [8, 0], sizes = [4, 256], strides = [1, 1]} : vector<12x256xf32> to vector<4x256xf32>
      %c0_9 = arith.constant 0 : index
      %c0_10 = arith.constant 0 : index
      %17 = vector.load %arg10[%c0_9, %c0_10] : memref<4x1xf32, #tpu.memory_space<vmem>>, vector<4x1xf32>
      %cst_11 = arith.constant dense<0xFF800000> : vector<4xf32>
      %18 = vector.multi_reduction <maximumf>, %16, %cst_11 [1] : vector<4x256xf32> to vector<4xf32>
      %19 = vector.shape_cast %18 : vector<4xf32> to vector<4x1xf32>
      %20 = arith.maximumf %17, %19 : vector<4x1xf32>
      %21 = arith.subf %17, %20 : vector<4x1xf32>
      %22 = math.exp %21 : vector<4x1xf32>
      %23 = vector.broadcast %20 : vector<4x1xf32> to vector<4x256xf32>
      %24 = arith.subf %16, %23 : vector<4x256xf32>
      %25 = math.exp %24 : vector<4x256xf32>
      %c0_12 = arith.constant 0 : index
      %c0_13 = arith.constant 0 : index
      %26 = vector.load %arg11[%c0_12, %c0_13] : memref<4x1xf32, #tpu.memory_space<vmem>>, vector<4x1xf32>
      %27 = arith.mulf %22, %26 : vector<4x1xf32>
      %cst_14 = arith.constant dense<0.000000e+00> : vector<4xf32>
      %28 = vector.multi_reduction <add>, %25, %cst_14 [1] : vector<4x256xf32> to vector<4xf32>
      %29 = vector.shape_cast %28 : vector<4xf32> to vector<4x1xf32>
      %30 = arith.addf %27, %29 : vector<4x1xf32>
      %c0_15 = arith.constant 0 : index
      %c0_16 = arith.constant 0 : index
      %31 = vector.load %arg11[%c0_15, %c0_16] : memref<4x1xf32, #tpu.memory_space<vmem>>, vector<4x1xf32>
      tpu.vector_store %arg11[%c0_15, %c0_16], %30 {strides = array<i32>} : memref<4x1xf32, #tpu.memory_space<vmem>>, vector<4x1xf32>,
      %c0_17 = arith.constant 0 : index
      %c0_18 = arith.constant 0 : index
      %32 = vector.load %arg12[%c0_17, %c0_18] : memref<4x8xf32, #tpu.memory_space<vmem>>, vector<4x8xf32>
      %33 = vector.broadcast %22 : vector<4x1xf32> to vector<4x8xf32>
      %34 = arith.mulf %33, %32 : vector<4x8xf32>
      %35 = arith.truncf %25 : vector<4x256xf32> to vector<4x256xbf16>
      %36 = arith.truncf %15 : vector<8x256xf32> to vector<8x256xbf16>
      %cst_19 = arith.constant dense<0.000000e+00> : vector<4x8xf32>
      %37 = tpu.matmul %35, %36, %cst_19 {dimension_numbers = #tpu.dot_dimension_numbers<[1], [1], [0], [0], [0, 0, 1, 0], [], []>} : vector<4x256xbf16>, vector<8x256xbf16>, vector<4x8xf32> -> vector<4x8xf32>
      %38 = arith.addf %34, %37 : vector<4x8xf32>
      %c0_20 = arith.constant 0 : index
      %c0_21 = arith.constant 0 : index
      %39 = vector.load %arg12[%c0_20, %c0_21] : memref<4x8xf32, #tpu.memory_space<vmem>>, vector<4x8xf32>
      tpu.vector_store %arg12[%c0_20, %c0_21], %38 {strides = array<i32>} : memref<4x8xf32, #tpu.memory_space<vmem>>, vector<4x8xf32>,
      %c0_22 = arith.constant 0 : index
      %c0_23 = arith.constant 0 : index
      %40 = vector.load %arg10[%c0_22, %c0_23] : memref<4x1xf32, #tpu.memory_space<vmem>>, vector<4x1xf32>
      tpu.vector_store %arg10[%c0_22, %c0_23], %20 {strides = array<i32>} : memref<4x1xf32, #tpu.memory_space<vmem>>, vector<4x1xf32>,
    } else {
    }
    %c1_i32 = arith.constant 1 : i32
    %10 = arith.cmpi eq, %arg1, %c1_i32 : i32
    %11 = arith.extui %10 : i1 to i32
    %c0_i32_6 = arith.constant 0 : i32
    %12 = arith.cmpi ne, %11, %c0_i32_6 : i32
    scf.if %12 {
      %c0_i32_7 = arith.constant 0 : i32
      %13 = arith.cmpi eq, %arg2, %c0_i32_7 : i32
      %14 = arith.extui %13 : i1 to i32
      %c0_i32_8 = arith.constant 0 : i32
      %15 = arith.cmpi ne, %14, %c0_i32_8 : i32
      scf.if %15 {
        %c0_24 = arith.constant 0 : index
        %c0_25 = arith.constant 0 : index
        %40 = vector.load %arg12[%c0_24, %c0_25] : memref<4x8xf32, #tpu.memory_space<vmem>>, vector<4x8xf32>
        %c0_26 = arith.constant 0 : index
        %c0_27 = arith.constant 0 : index
        %41 = vector.load %arg11[%c0_26, %c0_27] : memref<4x1xf32, #tpu.memory_space<vmem>>, vector<4x1xf32>
        %42 = tpu.reciprocal %41 {approx = true} : vector<4x1xf32> -> vector<4x1xf32>
        %43 = vector.broadcast %42 : vector<4x1xf32> to vector<4x8xf32>
        %44 = arith.mulf %40, %43 : vector<4x8xf32>
        %c0_28 = arith.constant 0 : index
        %c0_29 = arith.constant 0 : index
        %45 = vector.load %arg6[%c0_28, %c0_29] : memref<1x8xf32, #tpu.memory_space<vmem>>, vector<1x8xf32>
        %46 = vector.broadcast %45 : vector<1x8xf32> to vector<4x8xf32>
        %47 = arith.addf %44, %46 : vector<4x8xf32>
        %48 = tpu.iota {dimensions = array<i32: 0>} : vector<8x8xi32>
        %49 = tpu.iota {dimensions = array<i32: 1>} : vector<8x8xi32>
        %50 = arith.cmpi eq, %48, %49 : vector<8x8xi32>
        %51 = arith.extui %50 : vector<8x8xi1> to vector<8x8xi32>
        %52 = arith.sitofp %51 : vector<8x8xi32> to vector<8x8xf32>
        %53 = arith.truncf %52 : vector<8x8xf32> to vector<8x8xbf16>
        %54 = arith.truncf %47 : vector<4x8xf32> to vector<4x8xbf16>
        %cst_30 = arith.constant dense<0.000000e+00> : vector<8x4xf32>
        %55 = tpu.matmul %53, %54, %cst_30 {dimension_numbers = #tpu.dot_dimension_numbers<[1], [1], [0], [0], [0, 0, 1, 0], [], []>} : vector<8x8xbf16>, vector<4x8xbf16>, vector<8x4xf32> -> vector<8x4xf32>
        %56 = arith.truncf %55 : vector<8x4xf32> to vector<8x4xbf16>
        %c0_31 = arith.constant 0 : index
        %c0_32 = arith.constant 0 : index
        %57 = vector.load %arg13[%c0_31, %c0_32] : memref<8x4xbf16, #tpu.memory_space<vmem>>, vector<8x4xbf16>
        tpu.vector_store %arg13[%c0_31, %c0_32], %56 {strides = array<i32>} : memref<8x4xbf16, #tpu.memory_space<vmem>>, vector<8x4xbf16>,
      } else {
      }
      %c0_9 = arith.constant 0 : index
      %c0_10 = arith.constant 0 : index
      %16 = vector.load %arg5[%c0_9, %c0_10] : memref<4x4xbf16, #tpu.memory_space<vmem>>, vector<4x4xbf16>
      %cst = arith.constant dense<0.000000e+00> : vector<4x256xf32>
      %17 = tpu.matmul %16, %1, %cst {dimension_numbers = #tpu.dot_dimension_numbers<[1], [0], [0], [1], [0, 0, 1, 1], [], []>} : vector<4x4xbf16>, vector<4x256xbf16>, vector<4x256xf32> -> vector<4x256xf32>
      %c0_11 = arith.constant 0 : index
      %c0_12 = arith.constant 0 : index
      %18 = vector.load %arg7[%c0_11, %c0_12] : memref<4x1xf32, #tpu.memory_space<vmem>>, vector<4x1xf32>
      %19 = vector.broadcast %18 : vector<4x1xf32> to vector<4x256xf32>
      %20 = arith.addf %17, %19 : vector<4x256xf32>
      %cst_13 = arith.constant dense<0xFF800000> : vector<256xf32>
      %21 = vector.multi_reduction <maximumf>, %20, %cst_13 [0] : vector<4x256xf32> to vector<256xf32>
      %22 = vector.shape_cast %21 : vector<256xf32> to vector<1x256xf32>
      %23 = vector.broadcast %22 : vector<1x256xf32> to vector<4x256xf32>
      %24 = arith.subf %20, %23 : vector<4x256xf32>
      %25 = math.exp %24 : vector<4x256xf32>
      %cst_14 = arith.constant dense<0.000000e+00> : vector<256xf32>
      %26 = vector.multi_reduction <add>, %25, %cst_14 [0] : vector<4x256xf32> to vector<256xf32>
      %27 = vector.shape_cast %26 : vector<256xf32> to vector<1x256xf32>
      %c0_15 = arith.constant 0 : index
      %c0_16 = arith.constant 0 : index
      %28 = vector.load %arg13[%c0_15, %c0_16] : memref<8x4xbf16, #tpu.memory_space<vmem>>, vector<8x4xbf16>
      %29 = arith.truncf %25 : vector<4x256xf32> to vector<4x256xbf16>
      %cst_17 = arith.constant dense<0.000000e+00> : vector<8x256xf32>
      %30 = tpu.matmul %28, %29, %cst_17 {dimension_numbers = #tpu.dot_dimension_numbers<[1], [0], [0], [1], [0, 0, 1, 1], [], []>} : vector<8x4xbf16>, vector<4x256xbf16>, vector<8x256xf32> -> vector<8x256xf32>
      %31 = tpu.reciprocal %27 {approx = true} : vector<1x256xf32> -> vector<1x256xf32>
      %32 = vector.broadcast %31 : vector<1x256xf32> to vector<8x256xf32>
      %33 = arith.mulf %30, %32 : vector<8x256xf32>
      %c0_18 = arith.constant 0 : index
      %c0_19 = arith.constant 0 : index
      %c0_20 = arith.constant 0 : index
      %34 = vector.load %arg8[%c0_18, %c0_19, %c0_20] : memref<1x8x256xf32, #tpu.memory_space<vmem>>, vector<1x8x256xf32>
      %35 = vector.shape_cast %34 : vector<1x8x256xf32> to vector<8x256xf32>
      %36 = arith.addf %33, %35 : vector<8x256xf32>
      %c0_21 = arith.constant 0 : index
      %c0_22 = arith.constant 0 : index
      %c0_23 = arith.constant 0 : index
      %37 = vector.load %arg9[%c0_21, %c0_22, %c0_23] : memref<1x8x256xf32, #tpu.memory_space<vmem>>, vector<1x8x256xf32>
      %38 = vector.shape_cast %37 : vector<1x8x256xf32> to vector<8x256xf32>
      %39 = vector.shape_cast %36 : vector<8x256xf32> to vector<1x8x256xf32>
      tpu.vector_store %arg9[%c0_21, %c0_22, %c0_23], %39 {strides = array<i32>} : memref<1x8x256xf32, #tpu.memory_space<vmem>>, vector<1x8x256xf32>,
    } else {
    }
    return
  }
  func.func @transform_0(%arg0: i32, %arg1: i32, %arg2: i32) -> (i32, i32, i32) {
    %c0_i32 = arith.constant 0 : i32
    %c0_i32_0 = arith.constant 0 : i32
    return %arg0, %c0_i32, %arg2 : i32, i32, i32
  }
  func.func @transform_1(%arg0: i32, %arg1: i32, %arg2: i32) -> (i32, i32) {
    %c0_i32 = arith.constant 0 : i32
    %c0_i32_0 = arith.constant 0 : i32
    %c0_i32_1 = arith.constant 0 : i32
    return %c0_i32, %c0_i32_0 : i32, i32
  }
  func.func @transform_2(%arg0: i32, %arg1: i32, %arg2: i32) -> (i32, i32) {
    %c0_i32 = arith.constant 0 : i32
    %c0_i32_0 = arith.constant 0 : i32
    %c0_i32_1 = arith.constant 0 : i32
    return %c0_i32, %c0_i32_0 : i32, i32
  }
  func.func @transform_3(%arg0: i32, %arg1: i32, %arg2: i32) -> (i32, i32) {
    %c0_i32 = arith.constant 0 : i32
    %c0_i32_0 = arith.constant 0 : i32
    %c0_i32_1 = arith.constant 0 : i32
    return %c0_i32, %c0_i32_0 : i32, i32
  }
  func.func @transform_4(%arg0: i32, %arg1: i32, %arg2: i32) -> (i32, i32) {
    %c0_i32 = arith.constant 0 : i32
    %c0_i32_0 = arith.constant 0 : i32
    %c0_i32_1 = arith.constant 0 : i32
    return %c0_i32, %c0_i32_0 : i32, i32
  }
  func.func @transform_5(%arg0: i32, %arg1: i32, %arg2: i32) -> (i32, i32, i32) {
    %0 = arith.muli %arg2, %arg1 : i32
    %c0_i32 = arith.constant 0 : i32
    %c0_i32_0 = arith.constant 0 : i32
    return %arg0, %c0_i32, %0 : i32, i32, i32
  }
  func.func @transform_6(%arg0: i32, %arg1: i32, %arg2: i32) -> (i32, i32, i32) {
    %0 = arith.muli %arg2, %arg1 : i32
    %c0_i32 = arith.constant 0 : i32
    %c0_i32_0 = arith.constant 0 : i32
    return %arg0, %c0_i32, %0 : i32, i32, i32
  }
}

</mosaic_0001>

<bundles_post_ra>
// kernel: tpu_custom_call.1
= control target key start
LH: loop header
LB: loop body
LE: loop exit
PB: predicated region body
PF: predicated region fallthrough
CT: control target
= control target key end

     0   :  { %s1550_s0 = inlined_call_operand.hbm [shape: bf16[2,4,256], index: 0, kind: input, shape index: {}]   ;;  %s1551_s1 = inlined_call_operand.vmem [shape: bf16[12,4], index: 1, kind: input, shape index: {}]   ;;  %s1552_s2 = inlined_call_operand.hbm [shape: bf16[4,4], index: 2, kind: input, shape index: {}]   ;;  %s1553_s3 = inlined_call_operand.vmem [shape: f32[1,8], index: 3, kind: input, shape index: {}]   ;;  %s1554_s4 = inlined_call_operand.vmem [shape: f32[4,1], index: 4, kind: input, shape index: {}]   ;;  %s1555_s5 = inlined_call_operand.vmem [shape: f32[2,8,256], index: 5, kind: input, shape index: {}]   ;;  %s1556_s6 = inlined_call_operand.hbm [shape: f32[2,8,256], index: 6, kind: output, shape index: {}]  }
   0x1   :  { %1562 = sst [smem:[#allocation17_spill]] %s1552_s2 }
   0x2   :  { %11 = vsyncpa [#allocation7], 0 }
   0x3   :  { %13 = vsyncpa [#allocation7 + $0x1], 0 }
   0x4   :  { %14 = vsyncpa [#allocation10], 0 }
   0x5   :  { %15 = vsyncpa [#allocation8], 0 }
   0x6   :  { %17 = vsyncpa [#allocation8 + $0x1], 0  ;;  %s1281_s21 = smov 0   ;;  %s1283_s22 = smov 0  }
   0x7   :  { %s1285_s23 = smov 0   ;;  %s1287_s24 = smov 0  }
   0x8   :  { %s1289_s25 = smov 0   ;;  %s1291_s26 = smov 0  }
   0x9   :  { %s1293_s27 = smov 0   ;;  %s1295_s28 = smov 0  }
   0xa LB: > { %s912_s29 = sadd.s32 4294967295, %s1233_s28   ;;  %s913_s30 = sadd.s32 4294967294, %s1233_s28   ;;  %s1233_s28 = sphi %s1295_s28, %s23_s28   ;;  %s1229_s27 = sphi %s1293_s27, %s1587_s27   ;;  %s1225_s26 = sphi %s1291_s26, %s1586_s26   ;;  %s1221_s25 = sphi %s1289_s25, %s1585_s25   ;;  %s1217_s24 = sphi %s1287_s24, %s1584_s24   ;;  %s1213_s23 = sphi %s1285_s23, %s1583_s23   ;;  %s1209_s22 = sphi %s1283_s22, %s1582_s22   ;;  %s1205_s21 = sphi %s1281_s21, %s1581_s21  }
   0xb   : > { %p64_p0 = scmp.ne.s32.totalorder %s1209_s22, %s1205_s21  ;;  %p1325_p1 = scmp.eq.s32.totalorder %s912_s29, 0 }
   0xc   : > { %p1329_p2 = scmp.eq.s32.totalorder %s912_s29, 3  ;;  %p212_p3 = scmp.eq.s32.totalorder %s913_s30, 3 }
   0xd   : > { %s1563_s7 = scalar_select %p1325_p1, 1, 0 }
   0xe   : > { %s1564_s8 = scalar_select %p1329_p2, 1, 0 }
   0xf   : > { %p1335_p4 = por %p1325_p1, %p64_p0  ;;  %p914_p5 = scmp.ge.s32.totalorder %s1233_s28, 1 }
  0x10   : > { %p1340_p6 = por %p212_p3, %p64_p0  ;;  %p219_p7 = scmp.lt.s32.totalorder %s1233_s28, 5 }
  0x11   : > { %s1565_s9 = scalar_select %p1335_p4, 1, 0 }
  0x12   : > { %s1566_s10 = scalar_select %p1340_p6, 1, 0 }
  0x13   : > { %p1345_p8 = pnand %p914_p5, %p219_p7  ;;  %s1235_s12 = smov [#allocation9]  }
  0x14   : > { %s235_s13 = sshll.u32 %s1235_s12, 4  ;;  %s38_s15 = sadd.s32 1, %s1225_s26  ;;  %s236_s13 = int_to_ptr.vmem [resolvable:$true] %s235_s13 }
  0x15   : > { %s1567_s11 = scalar_select %p1345_p8, 1, 0 }
  0x16   : > { %p964_p9 = pneg %p1345_p8  ;;  %s1569_s2 = sld [smem:[#allocation17_spill]] }
  0x18   : > { %p1353_p10 = pnand %p964_p9, %p1325_p1 }
  0x1a   : > { %p1075_p12 = pneg %p1353_p10 }
  0x1c   : > { %s1073_s18 = scalar_lea.hbm %s1569_s2, 32 }
  0x1d   : > { %p1074_p11 = scmp.ne.s32.totalorder %s1569_s2, %s1073_s18  ;;  %p1080_p3 = scmp.lt.u32.totalorder %s1073_s18, %s1569_s2 }
  0x1f   : > { %p1076_p13 = pnand %p1075_p12, %p1074_p11 }
  0x21   : > { %p1077_p0 = pneg %p1076_p13 }
  0x23   : > { %p1082_p5 = pnand %p1080_p3, %p1077_p0 }
  0x25   : > { %1085 = shalt.err (!%p1082_p5)
}
  0x26   : > { %s1086_s12 = scalar_lea.vmem %s236_s13, 32  ;;  %p1094_p1 = scmp.lt.s32.totalorder %s236_s13, %s236_s13 }
  0x27   : > { %p1087_p7 = scmp.ne.s32.totalorder %s236_s13, %s1086_s12  ;;  %p1095_p4 = scmp.lt.s32.totalorder %s1086_s12, %s1086_s12 }
  0x29   : > { %p1089_p9 = pnand %p1087_p7, %p1075_p12  ;;  %p1096_p8 = por %p1095_p4, %p1094_p1 }
  0x2b   : > { %p1090_p6 = pneg %p1089_p9 }
  0x2d   : > { %p1097_p2 = pnand %p1096_p8, %p1090_p6 }
  0x2f   : > { %1100 = shalt.err (!%p1097_p2)
}
  0x30   : > { %967 = dma.hbm_to_vmem [thread:$0]  (!%p1353_p10), %s1569_s2, 32, %s236_s13, [#allocation10]  }
  0x31   : > { %p40_p11 = scmp.ge.s32.totalorder %s38_s15, 2  ;;  %s42_s18 = sadd.s32 1, %s1229_s27 }
  0x32   : > { %s51_s19 = sadd.s32 1, %s1213_s23  ;;  %p58_p1 = scmp.ne.s32.totalorder %s1213_s23, %s1209_s22 }
  0x33   : > { %s1589_s15 = smov (%p40_p11, %s38_s15), 0  ;;  %s1591_s18 = smov (!%p40_p11, %s42_s18), %s1229_s27 }
  0x34   : > { %1570 = sst [smem:[#allocation15_spill]] %s1589_s15  ;;  %p59_p2 = scmp.eq.s32.totalorder %s1233_s28, 0 }
  0x35   : > { %p1571_p4 = scmp.ne.s32.totalorder %s1564_s8, 0  ;;  %p44_p8 = scmp.ge.s32.totalorder %s1591_s18, 2 }
  0x36   : > { %p977_p12 = scmp.lt.s32.totalorder %s1233_s28, 4  ;;  %p60_p13 = por %p59_p2, %p58_p1 }
  0x37   : > { %p1384_p6 = por %p1571_p4, %p58_p1  ;;  %s252_s13 = sand.u32 1, %s1213_s23  }
  0x38   : > { %s1593_s18 = smov (%p44_p8, %s1591_s18), 0  ;;  %s917_s20 = sshll.u32 %s252_s13, 2 }
  0x39   : > { %1573 = sst [smem:[#allocation16_spill]] %s1593_s18  ;;  %s46_s29 = ssub.s32 %s1229_s27, %s1593_s18 }
  0x3a   : > { %p49_p10 = scmp.eq.s32.totalorder %s46_s29, 0  ;;  %s944_s30 = sshll.u32 %s1229_s27, 6 }
  0x3b   : > { %s1398_s8 = scalar_lea.hbm %s1550_s0, %s944_s30  ;;  %s256_s17 = scalar_lea.vmem [#allocation6], %s917_s20 }
  0x3c   : > { %s266_s2 = sshll.u32 %s256_s17, 4  ;;  %p1407_p0 = pnand %p977_p12, %p60_p13  ;;  %s1403_s2 = int_to_ptr.vmem [resolvable:$true] %s266_s2 }
  0x3d   : > { %s1401_s15 = scalar_select %p49_p10, %s1213_s23, %s51_s19  }
  0x3e   : > { %s253_s29 = scalar_lea.sflag [#allocation7], %s252_s13  ;;  %s1101_s30 = scalar_lea.hbm %s1398_s8, 64 }
  0x3f   : > { %p1102_p3 = scmp.ne.s32.totalorder %s1398_s8, %s1101_s30  ;;  %p1103_p5 = pneg %p1407_p0 }
  0x40   : > { %s1106_s12 = scalar_lea.hbm %s1550_s0, 128  ;;  %p1107_p11 = scmp.lt.u32.totalorder %s1398_s8, %s1550_s0 }
  0x41   : > { %p1104_p7 = pnand %p1103_p5, %p1102_p3  ;;  %p1108_p1 = scmp.lt.u32.totalorder %s1106_s12, %s1101_s30 }
  0x42   : > { %p1110_p4 = scmp.lt.u32.totalorder %s1101_s30, %s1398_s8 }
  0x43   : > { %p1105_p9 = pneg %p1104_p7  ;;  %p1109_p2 = por %p1108_p1, %p1107_p11 }
  0x45   : > { %p1111_p8 = por %p1110_p4, %p1109_p2 }
  0x47   : > { %p1112_p12 = pnand %p1111_p8, %p1105_p9 }
  0x49   : > { %1115 = shalt.err (!%p1112_p12)
}
  0x4a   : > { %s1116_s13 = scalar_lea.vmem %s1403_s2, 64  ;;  %s1236_s19 = smov [#allocation6]  }
  0x4b   : > { %p1117_p13 = scmp.ne.s32.totalorder %s1403_s2, %s1116_s13  ;;  %s1121_s20 = sshll.u32 %s1236_s19, 4  ;;  %s1122_s20 = int_to_ptr.vmem [resolvable:$false] %s1121_s20 }
  0x4c   : > { %s1123_s16 = scalar_lea.vmem %s1122_s20, 128  ;;  %p1124_p7 = scmp.lt.s32.totalorder %s1403_s2, %s1122_s20 }
  0x4d   : > { %p1119_p10 = pnand %p1117_p13, %p1103_p5  ;;  %p1125_p11 = scmp.lt.s32.totalorder %s1123_s16, %s1116_s13 }
  0x4f   : > { %p1120_p3 = pneg %p1119_p10  ;;  %p1126_p1 = por %p1125_p11, %p1124_p7 }
  0x51   : > { %p1127_p2 = pnand %p1126_p1, %p1120_p3 }
  0x53   : > { %1130 = shalt.err (!%p1127_p2)
}
  0x54   : > { %971 = dma.hbm_to_vmem [thread:$0]  (!%p1407_p0), %s1398_s8, 64, %s1403_s2, %s253_s29  }
  0x55   : > { %p1575_p9 = scmp.ne.s32.totalorder %s1567_s11, 0 }
  0x56   : > { %s1439_s30 = sand.u32 (!%p1575_p9), 1, %s1209_s22   ;;  %p1576_p5 = scmp.ne.s32.totalorder (!%p1575_p9), %s1565_s9, 0 }
  0x57   : > { %290 = sbr.rel (%p1575_p9) target bundleno = 1467 (0x5bb), region = 44  ;;  %s921_s12 = sshll.u32 (!%p1575_p9), %s1439_s30, 2 }
  0x58   : > { %s293_s17 = scalar_lea.sflag (!%p1575_p9), [#allocation7], %s1439_s30  ;;  %s296_s13 = scalar_lea.vmem (!%p1575_p9), [#allocation6], %s921_s12 }
  0x5e   : > { %1192 = dma.done.wait (%p1576_p5), %s293_s17, 64  }
  0x5f   : > { %1194 = vsyncadd (%p1576_p5), %s293_s17, 4294967232  ;;  %p1577_p4 = scmp.ne.s32.totalorder %s1563_s7, 0 }
  0x61   : > { %1196 = dma.done.wait (%p1577_p4), [#allocation10], 32  }
  0x62   : > { %1198 = vsyncadd (%p1577_p4), [#allocation10], 4294967264  ;;  %s923_s2 = sshll.u32 %s1439_s30, 4  ;;  %p342_p0 = scmp.lt.s32.totalorder %s1221_s25, 1  ;;  %v1460_v0 = vld [vmem:[%s296_s13] sm:$0xf] }
  0x63   : > { %p356_p8 = scmp.eq.s32.totalorder %s1217_s24, 0  ;;  %s1462_s19 = scalar_lea.vmem [#allocation11], %s923_s2 }
  0x64   : > { %s343_s11 = scalar_select %p342_p0, %s1221_s25, 1 }
  0x65   : > { %361 = sbr.rel (!%p356_p8) target bundleno = 108 (0x6c), region = 56  ;;  %vm362_vm0 = vcmask (%p356_p8), 3072   ;;  %vm365_vm1 = vcmask (%p356_p8), 60416   ;;  %v1237_v1 = vmov (%p356_p8), -inf   ;;  %v1238_v2 = vmov (%p356_p8), 0.0  }
  0x66   : > { %s945_s18 = sshll.u32 %s343_s11, 4  ;;  %363 = vst.msk [vmem:[#allocation2] sm:$0xf] (%p356_p8), %vm362_vm0, %v1237_v1  ;;  %364 = vst.msk [vmem:[#allocation3] sm:$0xf] (%p356_p8), %vm362_vm0, %v1238_v2 }
  0x67   : > { %s1458_s9 = scalar_lea.vmem %s1555_s5, %s945_s18  ;;  %366 = vst.msk [vmem:[#allocation4] sm:$0xf] (%p356_p8), %vm365_vm1, %v1238_v2 }
  0x6c PF: > { %p927_p12 = scmp.ne.s32.totalorder %s1217_s24, 0 }
  0x6d   : > { %v381_v3 = vlaneseq (!%p927_p12)  ;;  %v1239_v4 = vmov (!%p927_p12), 1983009808   ;;  %v1240_v6 = vmov (!%p927_p12), 0   ;;  %vm390_vm2 = vcmask (!%p927_p12), 1041408   ;;  %v1055_v13 = vld [vmem:[%s1551_s1] sm:$0x3f] (!%p927_p12)  }
  0x6e   : > { %369 = sbr.rel (%p927_p12) target bundleno = 848 (0x350), region = 60  ;;  %v379_v5 = vunpack.c.l.s4 (!%p927_p12), %v1239_v4  ;;  %429 = vmatprep.mubr.bf16.mxu0 (!%p927_p12), %v1240_v6  ;;  %1053 = vset.pattern.permute.xlu0 (!%p927_p12), %v1240_v6  ;;  %vm386_vm3 = vcmask (!%p927_p12), 31744   ;;  %vm441_vm4 = vcmask (!%p927_p12), 1043456   ;;  %v440_v23 = vld [vmem:[#allocation2] sm:$0xf] (!%p927_p12)  ;;  %vm470_vm5 = vcmask (!%p927_p12), 3072  }
  0x6f   : > { %v382_v7 = vshrl.u32 (!%p927_p12), %v381_v3, 7  ;;  %1054 = vset.pattern.permute.xlu1 (!%p927_p12), %v1240_v6  ;;  %v462_v41 = vld [vmem:[#allocation3] sm:$0xf] (!%p927_p12)  ;;  %v472_v45 = vld [vmem:[#allocation4] sm:$0xf] (!%p927_p12)  ;;  %vm524_vm6 = vcmask (!%p927_p12), 60416  }
  0x70   : > { %v380_v8 = vunpack.c.0.s8 (!%p927_p12), %v379_v5 }
  0x72   : > { %v383_v9 = vsub.s32 (!%p927_p12), %v380_v8, %v382_v7 }
  0x74   : > { %v384_v10 = vrot.slane (!%p927_p12), %v1460_v0, %v383_v9 }
  0x76   : > { %v385_v11 = vcombine.high %v384_v10, %v384_v10  ;;  %v392_v12 = vsel %vm390_vm2, %v384_v10, 0 }
  0x78   : > { %929 = vmatprep.subr.msk.bf16.mxu0 %vm390_vm2, %v385_v11 }
  0x79   : > { %398 = vmatpush1.bf16.msra.mxu0 %v392_v12 }
  0x7c   : > { %930 = vmatmul.mubr.msk.bf16.vlgmr.msra.gmra.mrb[0].mxu0 %vm386_vm3, %v1055_v13 }
 0x14f   : > { %v431_v14 = vpop.f32.mrb[0].mxu0 }
 0x150   : > { %v433_v15 = vpop.f32.mrb[1].mxu0  ;;  %v481_v18 = vpack.c.bf16 %v431_v14, %v431_v14 }
 0x151   : > { %v435_v16 = vpop.f32.mrb[2].mxu0  ;;  %v482_v17 = vpack.c.bf16 %v433_v15, %v433_v15 }
 0x152   : > { %v437_v19 = vpop.f32.mrb[3].mxu0  ;;  %v442_v20 = vsel %vm441_vm4, %v435_v16, -inf }
 0x153   : > { %v443_v21 = vsel %vm441_vm4, %v437_v19, -inf  ;;  %483 = vmatprep.subr.bf16.mxu1 %v482_v17 }
 0x154   : > { %484 = vmatpush1.bf16.xpose.msra.mxu1 %v481_v18  ;;  %v444_v22 = vmax.f32 %v442_v20, %v443_v21 }
 0x156   : > { %445 = vmax.xlane.f32.xlu0 %v444_v22 }
 0x1e3   : > { %v446_v24 = vpop.xlane.xlu0 %445 }
 0x1e4   : > { %v447_v25 = vmax.f32 %v440_v23, %v446_v24 }
 0x1e6   : > { %v448_v26 = vsub.f32 %v440_v23, %v447_v25  ;;  %526 = vst.msk [vmem:[#allocation2] sm:$0xf] %vm470_vm5, %v447_v25  ;;  %453 = vperm.xlu0 %1053, %v447_v25  }
 0x1e8   : > { %v449_v39 = vmul.f32 1.442695, %v448_v26 }
 0x265   : > { %v454_v27 = vpop.permute.xlu0 %453 }
 0x266   : > { %v456_v28 = vsub.f32 %v435_v16, %v454_v27  ;;  %v457_v29 = vsub.f32 %v437_v19, %v454_v27 }
 0x268   : > { %v458_v30 = vmul.f32 1.442695, %v456_v28  ;;  %v460_v31 = vmul.f32 1.442695, %v457_v29 }
 0x26a   : > { %1056 = vpow2.f32 %v458_v30 }
 0x26b   : > { %1058 = vpow2.f32 %v460_v31 }
 0x26c   : > { %1060 = vpow2.f32 %v449_v39 }
 0x274   : > { %v1057_v32 = vpop.eup %1056 }
 0x275   : > { %v1059_v33 = vpop.eup %1058  ;;  %v479_v34 = vpack.c.bf16 %v1057_v32, %v1057_v32  ;;  %v464_v35 = vsel %vm441_vm4, %v1057_v32, 0.0 }
 0x276   : > { %v480_v36 = vpack.c.bf16 %v1059_v33, %v1059_v33  ;;  %v465_v37 = vsel %vm441_vm4, %v1059_v33, 0.0  ;;  %v1061_v40 = vpop.eup %1060 }
 0x277   : > { %v466_v38 = vadd.f32 %v465_v37, %v464_v35  ;;  %v463_v42 = vmul.f32 %v1061_v40, %v462_v41 }
 0x278   : > { %515 = vmatprep.mubr.bf16.mxu1 %v480_v36 }
 0x279   : > { %516 = vmatmul.mubr.bf16.vlgmr.msra.gmra.mrb[0].mxu1 %v479_v34  ;;  %467 = vadd.xlane.f32.xlu1 %v466_v38 }
 0x28a   : > { %475 = vperm.xlu1 %1054, %v1061_v40  }
 0x306   : > { %v468_v43 = vpop.xlane.xlu1 %467 }
 0x307   : > { %v469_v44 = vadd.f32 %v468_v43, %v463_v42 }
 0x309   : > { %471 = vst.msk [vmem:[#allocation3] sm:$0xf] %vm470_vm5, %v469_v44 }
 0x30a   : > { %v476_v46 = vpop.permute.xlu1 %475 }
 0x30b   : > { %v478_v47 = vmul.f32 %v476_v46, %v472_v45 }
 0x34c   : > { %v517_v48 = vpop.f32.mrb[0].mxu1 }
 0x34d   : > { %v523_v49 = vadd.f32 %v517_v48, %v478_v47  ;;  %v519_v50 = vpop.f32.mrb[1].mxu1 }
 0x34e   : > { %v520_v51 = vpop.f32.mrb[2].mxu1 }
 0x34f   : > { %525 = vst.msk [vmem:[#allocation4] sm:$0xf] %vm524_vm6, %v523_v49  ;;  %v521_v52 = vpop.f32.mrb[3].mxu1 }
 0x350 PF: > { %p931_p13 = scmp.ne.s32.totalorder %s1217_s24, 1 }
 0x351   : > { %v551_v53 = vlaneseq (!%p931_p13)  ;;  %v535_v54 = vld [vmem:[#allocation3] sm:$0xf] (!%p931_p13)  ;;  %v1241_v55 = vmov (!%p931_p13), 1983009808   ;;  %v1242_v57 = vmov (!%p931_p13), 0   ;;  %vm630_vm7 = vcmask (!%p931_p13), 1041408  }
 0x352   : > { %530 = sbr.rel (%p931_p13) target bundleno = 1443 (0x5a3), region = 64  ;;  %v619_v56 = vunpack.c.l.s4 (!%p931_p13), %v1241_v55  ;;  %1062 = vset.pattern.permute.xlu0 (!%p931_p13), %v1242_v57  ;;  %1063 = vrcp.f32 (!%p931_p13), %v535_v54  ;;  %669 = vmatprep.mubr.bf16.mxu1 (!%p931_p13), %v1242_v57  ;;  %v610_v2 = vld [vmem:[#allocation9] sm:$0x3] (!%p931_p13)  ;;  %vm626_vm8 = vcmask (!%p931_p13), 31744   ;;  %v611_v3 = vld [vmem:[%s1554_s4] sm:$0xf] (!%p931_p13) }
 0x353   : > { %v552_v58 = vshrl.u32 (!%p931_p13), %v551_v53, 7  ;;  %v554_v4 = vand.u32 (!%p931_p13), 127, %v551_v53  ;;  %v1243_v5 = vmov (!%p931_p13), 0.0   ;;  %vm1244_vm10 = vmmov (!%p931_p13), 0   ;;  %v932_v7 = vld [vmem:[%s1553_s3] ss:$0 sm:$0xff] (!%p931_p13) }
 0x354   : > { %v620_v59 = vunpack.c.0.s8 (!%p931_p13), %v619_v56  ;;  %950 = vmatprep.subr.bf16.mxu0 (!%p931_p13), %v1243_v5  ;;  %952 = vmatprep.mubr.msk.bf16.mxu0 (!%p931_p13), %vm1244_vm10, %v1243_v5  ;;  %vm560_vm11 = vcmask (!%p931_p13), 64512   ;;  %vm678_vm12 = vcmask (!%p931_p13), 1043456   ;;  %vm608_vm13 = vcmask (!%p931_p13), 27648  }
 0x355   : > { %vm555_vm9 = vcmp.eq.s32.totalorder (!%p931_p13), %v552_v58, %v554_v4 }
 0x356   : > { %v623_v60 = vsub.s32 (!%p931_p13), %v620_v59, %v552_v58  ;;  %v534_v6 = vld [vmem:[#allocation4] sm:$0xf] (!%p931_p13) }
 0x358   : > { %v624_v61 = vrot.slane (!%p931_p13), %v1460_v0, %v623_v60  ;;  %v933_v0 = vsel (!%p931_p13), %vm555_vm9, 1.0, %v1243_v5 }
 0x359   : > { %v558_v13 = vpack.c.bf16 %v933_v0, %v933_v0 }
 0x35a   : > { %v625_v62 = vcombine.high %v624_v61, %v624_v61  ;;  %v632_v63 = vsel %vm630_vm7, %v624_v61, 0 }
 0x35c   : > { %v1064_v1 = vpop.eup %1063  ;;  %935 = vmatprep.subr.msk.bf16.mxu1 %vm630_vm7, %v625_v62 }
 0x35d   : > { %638 = vmatpush1.bf16.msra.mxu1 %v632_v63  ;;  %539 = vperm.xlu0 %1062, %v1064_v1  }
 0x360   : > { %936 = vmatmul.mubr.msk.bf16.vlgmr.msra.gmra.mrb[0].mxu1 %vm626_vm8, %v610_v2 }
 0x361   : > { %614 = vperm.xlu0 %1062, %v611_v3   ;;  %757 = vmatprep.mubr.bf16.mxu1 %v1242_v57  ;;  %v770_v3 = vld [vmem:[%s1458_s9] sm:$0xff] }
 0x3dc   : > { %v540_v8 = vpop.permute.xlu0 %539 }
 0x3dd   : > { %v542_v9 = vmul.f32 %v540_v8, %v534_v6  ;;  %v771_v6 = vld [vmem:[%s1458_s9 + $0x8] sm:$0xff] }
 0x3df   : > { %v550_v10 = vadd.f32 %v932_v7, %v542_v9 }
 0x3e0   : > { %v615_v14 = vpop.permute.xlu0 %614 }
 0x3e1   : > { %v559_v11 = vpack.c.bf16 %v550_v10, %v550_v10 }
 0x3e3   : > { %v565_v12 = vsel %vm560_vm11, %v559_v11, 0 }
 0x3e4   : > { %951 = vmatpush3.bf16.xpose.msra.mxu0 %v565_v12 }
 0x3eb   : > { %953 = vmatmul.mubr.msk.bf16.vlgmr.msra.gmra.mrb[0].mxu0 %vm560_vm11, %v558_v13 }
 0x433   : > { %v671_v15 = vpop.f32.mrb[0].mxu1 }
 0x434   : > { %v672_v16 = vadd.f32 %v671_v15, %v615_v14  ;;  %v673_v17 = vpop.f32.mrb[1].mxu1 }
 0x435   : > { %v674_v18 = vadd.f32 %v673_v17, %v615_v14  ;;  %v675_v19 = vpop.f32.mrb[2].mxu1 }
 0x436   : > { %v679_v20 = vsel %vm678_vm12, %v672_v16, -inf  ;;  %v676_v21 = vpop.f32.mrb[3].mxu1 }
 0x437   : > { %v680_v22 = vrot.slane %v679_v20, 4  ;;  %v686_v23 = vsel %vm678_vm12, %v674_v18, -inf }
 0x438   : > { %v687_v24 = vrot.slane %v686_v23, 4 }
 0x439   : > { %v681_v25 = vmax.f32 %v679_v20, %v680_v22 }
 0x43a   : > { %v688_v26 = vmax.f32 %v686_v23, %v687_v24 }
 0x43b   : > { %v682_v27 = vrot.slane %v681_v25, 2 }
 0x43c   : > { %v689_v28 = vrot.slane %v688_v26, 2 }
 0x43d   : > { %v683_v29 = vmax.f32 %v681_v25, %v682_v27 }
 0x43e   : > { %v690_v30 = vmax.f32 %v688_v26, %v689_v28 }
 0x43f   : > { %v684_v31 = vrot.slane %v683_v29, 1 }
 0x440   : > { %v691_v32 = vrot.slane %v690_v30, 1 }
 0x441   : > { %v685_v33 = vmax.f32 %v683_v29, %v684_v31 }
 0x442   : > { %v692_v34 = vmax.f32 %v690_v30, %v691_v32 }
 0x443   : > { %v693_v35 = vsub.f32 %v672_v16, %v685_v33 }
 0x444   : > { %v694_v36 = vsub.f32 %v674_v18, %v692_v34 }
 0x445   : > { %v695_v37 = vmul.f32 1.442695, %v693_v35 }
 0x446   : > { %v697_v38 = vmul.f32 1.442695, %v694_v36 }
 0x447   : > { %1065 = vpow2.f32 %v695_v37 }
 0x448   : > { %1067 = vpow2.f32 %v697_v38 }
 0x451   : > { %v1066_v39 = vpop.eup %1065 }
 0x452   : > { %v1068_v40 = vpop.eup %1067  ;;  %v699_v41 = vsel %vm678_vm12, %v1066_v39, 0.0  ;;  %v714_v42 = vpack.c.bf16 %v1066_v39, %v1066_v39 }
 0x453   : > { %v706_v43 = vsel %vm678_vm12, %v1068_v40, 0.0  ;;  %v715_v44 = vpack.c.bf16 %v1068_v40, %v1068_v40  ;;  %v700_v52 = vrot.slane %v699_v41, 4 }
 0x454   : > { %v720_v45 = vsel %vm630_vm7, %v714_v42, 0  ;;  %v707_v53 = vrot.slane %v706_v43, 4 }
 0x455   : > { %937 = vmatprep.subr.msk.bf16.mxu1 %vm630_vm7, %v715_v44  ;;  %v701_v54 = vadd.f32 %v700_v52, %v699_v41 }
 0x456   : > { %726 = vmatpush1.bf16.msra.mxu1 %v720_v45  ;;  %v708_v55 = vadd.f32 %v707_v53, %v706_v43 }
 0x457   : > { %v702_v56 = vrot.slane %v701_v54, 2 }
 0x458   : > { %v709_v57 = vrot.slane %v708_v55, 2 }
 0x459   : > { %v703_v58 = vadd.f32 %v702_v56, %v701_v54 }
 0x45a   : > { %v710_v59 = vadd.f32 %v709_v57, %v708_v55 }
 0x45b   : > { %v704_v60 = vrot.slane %v703_v58, 1 }
 0x45c   : > { %v711_v61 = vrot.slane %v710_v59, 1 }
 0x45d   : > { %v705_v62 = vadd.f32 %v704_v60, %v703_v58 }
 0x45e   : > { %v712_v63 = vadd.f32 %v711_v61, %v710_v59 }
 0x45f   : > { %1069 = vrcp.f32 %v705_v62 }
 0x460   : > { %1071 = vrcp.f32 %v712_v63 }
 0x469   : > { %v1070_v1 = vpop.eup %1069 }
 0x46a   : > { %v1072_v4 = vpop.eup %1071 }
 0x4be   : > { %v601_v46 = vpop.f32.mrb[0].mxu0 }
 0x4bf   : > { %v607_v47 = vpack.c.bf16 %v601_v46, %v601_v46  ;;  %v954_v48 = vpop.f32.mrb[1].mxu0 }
 0x4c0   : > { %v604_v49 = vpop.f32.mrb[2].mxu0 }
 0x4c1   : > { %609 = vst.msk [vmem:[#allocation5] sm:$0xf] %vm608_vm13, %v607_v47  ;;  %v955_v50 = vpop.f32.mrb[3].mxu0 }
 0x4c8   : > { %v713_v51 = vld [vmem:[#allocation5] sm:$0xf] }
 0x4c9   : > { %938 = vmatmul.mubr.msk.bf16.vlgmr.msra.gmra.mrb[4].mxu1 %vm626_vm8, %v713_v51 }
 0x59c   : > { %v759_v2 = vpop.f32.mrb[4].mxu1 }
 0x59d   : > { %v768_v5 = vmul.f32 %v1070_v1, %v759_v2  ;;  %v761_v0 = vpop.f32.mrb[5].mxu1 }
 0x59e   : > { %v769_v7 = vmul.f32 %v1072_v4, %v761_v0  ;;  %v763_v8 = vpop.f32.mrb[6].mxu1 }
 0x59f   : > { %v772_v9 = vadd.f32 %v770_v3, %v768_v5  ;;  %v764_v10 = vpop.f32.mrb[7].mxu1 }
 0x5a0   : > { %v773_v11 = vadd.f32 %v771_v6, %v769_v7 }
 0x5a1   : > { %774 = vst [vmem:[%s1462_s19] sm:$0xff] %v772_v9 }
 0x5a2   : > { %775 = vst [vmem:[%s1462_s19 + $0x8] sm:$0xff] %v773_v11 }
 0x5a3 PF: > { %s947_s13 = sshll.u32 %s1221_s25, 8  ;;  %s794_s8 = sshll.u32 %s1462_s19, 4  ;;  %s795_s8 = int_to_ptr.vmem [resolvable:$true] %s794_s8 }
 0x5a4   : > { %s1501_s18 = scalar_lea.hbm %s1556_s6, %s947_s13  ;;  %s777_s29 = scalar_lea.sflag [#allocation8], %s1439_s30 }
 0x5a5   : > { %s1131_s9 = scalar_lea.vmem %s795_s8, 256  ;;  %s1245_s7 = smov [#allocation11]  }
 0x5a6   : > { %p1132_p10 = scmp.ne.s32.totalorder %s795_s8, %s1131_s9  ;;  %s1135_s20 = sshll.u32 %s1245_s7, 4  ;;  %s1136_s20 = int_to_ptr.vmem [resolvable:$false] %s1135_s20 }
 0x5a7   : > { %s1137_s24 = scalar_lea.vmem %s1136_s20, 512  ;;  %p1138_p11 = scmp.lt.s32.totalorder %s795_s8, %s1136_s20 }
 0x5a8   : > { %p1133_p3 = pnand %p1132_p10, %p1384_p6  ;;  %p1139_p1 = scmp.lt.s32.totalorder %s1137_s24, %s1131_s9 }
 0x5aa   : > { %p1134_p7 = pneg %p1133_p3  ;;  %p1140_p2 = por %p1139_p1, %p1138_p11 }
 0x5ac   : > { %p1141_p9 = pnand %p1140_p2, %p1134_p7 }
 0x5ae   : > { %1144 = shalt.err (!%p1141_p9)
}
 0x5af   : > { %s1145_s25 = scalar_lea.hbm %s1501_s18, 256  ;;  %s1149_s16 = scalar_lea.hbm %s1556_s6, 512 }
 0x5b0   : > { %p1146_p5 = scmp.ne.s32.totalorder %s1501_s18, %s1145_s25  ;;  %p1150_p8 = scmp.lt.u32.totalorder %s1501_s18, %s1556_s6 }
 0x5b1   : > { %p1151_p12 = scmp.lt.u32.totalorder %s1149_s16, %s1145_s25  ;;  %p1153_p10 = scmp.lt.u32.totalorder %s1145_s25, %s1501_s18 }
 0x5b2   : > { %p1147_p4 = pnand %p1146_p5, %p1384_p6 }
 0x5b3   : > { %p1152_p13 = por %p1151_p12, %p1150_p8 }
 0x5b4   : > { %p1148_p0 = pneg %p1147_p4 }
 0x5b5   : > { %p1154_p3 = por %p1153_p10, %p1152_p13 }
 0x5b7   : > { %p1155_p7 = pnand %p1154_p3, %p1148_p0 }
 0x5b9   : > { %1158 = shalt.err (!%p1155_p7)
}
 0x5ba   : > { %962 = dma.vmem_to_hbm [thread:$0]  (%p1384_p6), %s795_s8, 256, %s1501_s18, %s777_s29  }
 0x5bb PF: > { %p979_p11 = scmp.ge.s32.totalorder %s1233_s28, 2  ;;  %s806_s13 = sand.u32 1, %s1205_s21  }
 0x5bc   : > { %p1578_p1 = scmp.ne.s32.totalorder %s1566_s10, 0  ;;  %s807_s2 = scalar_lea.sflag [#allocation8], %s806_s13 }
 0x5be   : > { %p973_p2 = pnand %p979_p11, %p1578_p1 }
 0x5c0   : > { %1200 = dma.done.wait (!%p973_p2), %s807_s2, 256  }
 0x5c1   : > { %1202 = vsyncadd (!%p973_p2), %s807_s2, 4294967040  ;;  %s23_s28 = sadd.s32 1, %s1233_s28   ;;  %s1579_s14 = sld [smem:[#allocation15_spill]] }
 0x5c2   : > { %p20_p9 = scmp.ge.s32.totalorder %s23_s28, 6   ;;  %s1580_s11 = sld [smem:[#allocation16_spill]] }
 0x5c3   : > { %s1581_s21 = smov %s1209_s22  ;;  %s1582_s22 = smov %s1213_s23 }
 0x5c4   : > { %s1583_s23 = smov %s1401_s15  ;;  %s1584_s24 = smov %s1225_s26 }
 0x5c5   : > { %s1585_s25 = smov %s1229_s27  ;;  %22 = sbr.rel (!%p20_p9) target bundleno = 10 (0xa), region = 112 }
 0x5c7   : > { %s1586_s26 = smov %s1579_s14 }
 0x5c8   : > { %s1587_s27 = smov %s1580_s11 }
 0x5cc   :  { %812 = vsyncpa [#allocation7], 1 }
 0x5cd   :  { %814 = vsyncpa [#allocation7 + $0x1], 1 }
 0x5ce   :  { %815 = vsyncpa [#allocation10], 1 }
 0x5cf   :  { %816 = vsyncpa [#allocation8], 1 }
 0x5d0   :  { %818 = vsyncpa [#allocation8 + $0x1], 1 }

</bundles_post_ra>
